<compile_context>
chip_gen: v6e
topology: v6e:2x2x1
jax: 0.10.0
libtpu: 0.0.40
codegen_flags: <defaults>
</compile_context>

<pallas_src>
import functools

import jax
import jax.numpy as jnp
from jax.experimental import pallas as pl
from jax.experimental.pallas import tpu as pltpu


def _round_up(x: int, m: int) -> int:
    return (x + m - 1) // m * m


def _pag_kernel(u_ref, w_ref, b_ref, out_ref, acc_ref, *, n_total, tk, mask_k):
    """One (batch-tile, feature-tile) step of the gate.

    u_ref  : (TB, TK) VMEM  -- user-embedding rows for this tile
    w_ref  : (1, TK)  VMEM  -- Linear weight slice (resident across batch tiles)
    b_ref  : (1,)     SMEM  -- Linear bias scalar
    out_ref: (1, TB)  VMEM  -- lane-dense eta row for this batch tile
    acc_ref: (1, TB)  VMEM  -- f32 partial-sum accumulator (scratch)
    """
    k = pl.program_id(1)

    @pl.when(k == 0)
    def _():
        acc_ref[...] = jnp.zeros_like(acc_ref)

    w = w_ref[...].astype(jnp.float32)
    u = u_ref[...].astype(jnp.float32)
    if mask_k:
        # Last feature tile may be padded; zero both operands in the padded
        # lanes so stale VMEM contents cannot pollute the accumulation.
        col = jax.lax.broadcasted_iota(jnp.int32, (1, tk), 1)
        valid = (k * tk + col) < n_total
        w = jnp.where(valid, w, 0.0)
        u = jnp.where(valid, u, 0.0)

    # s[0, t] = sum_n w[0, n] * u[t, n]  (contract last dims) -> lane-dense (1, TB).
    acc_ref[...] += jax.lax.dot_general(
        w, u,
        dimension_numbers=(((1,), (1,)), ((), ())),
        preferred_element_type=jnp.float32,
    )

    @pl.when(k == pl.num_programs(1) - 1)
    def _():
        eta = jax.nn.sigmoid(acc_ref[...] + b_ref[0])   # EUP sigmoid, f32 compute
        out_ref[...] = eta.astype(out_ref.dtype)


def personalized_aggregator_gate(
    u: jax.Array,
    weight: jax.Array,
    bias: jax.Array,
    *,
    max_rows_per_tile: int | None = None,
) -> jax.Array:
    """u: (B, N), weight: (1, N), bias: (1,) -> eta: (B,)"""
    assert u.ndim == 2
    B, N = u.shape
    assert weight.shape == (1, N)
    assert bias.shape == (1,)

    LANE = 128
    itemsize = jnp.dtype(u.dtype).itemsize
    # Per-u-buffer padded VMEM budget (~8 MiB) -> ~16 MiB double-buffered, well
    # under the 48 MiB limit requested below and v7x's 64 MiB physical VMEM.
    per_buf_budget = 8 * 1024 * 1024
    max_tb = 32768

    # Real (padded) footprint of one row: N pads up to a multiple of 128 lanes.
    padded_row_bytes = _round_up(N, LANE) * itemsize

    tb_cap = (per_buf_budget // padded_row_bytes) // LANE * LANE
    tb_cap = min(tb_cap, max_tb)
    if max_rows_per_tile is not None:
        tb_cap = min(tb_cap, max(LANE, (max_rows_per_tile // LANE) * LANE))

    if tb_cap >= LANE:
        # Common case: whole feature dim fits in one block per tile.
        TB = B if B <= tb_cap else tb_cap
        TK = N
    else:
        # Rare huge-N case: minimal batch tile + K-tiling over features.
        TB = B if B <= LANE else LANE
        tk_cap = (per_buf_budget // (_round_up(TB, 8) * itemsize)) // LANE * LANE
        TK = max(LANE, tk_cap)
        if TK >= N:
            TK = N

    nk = pl.cdiv(N, TK)
    mask_k = (N % TK) != 0
    grid = (pl.cdiv(B, TB), nk)

    kernel = functools.partial(_pag_kernel, n_total=N, tk=TK, mask_k=mask_k)

    out = pl.pallas_call(
        kernel,
        out_shape=jax.ShapeDtypeStruct((1, B), u.dtype),
        grid=grid,
        in_specs=[
            pl.BlockSpec((TB, TK), lambda i, k: (i, k)),             # u: tiled batch x feature
            pl.BlockSpec((1, TK), lambda i, k: (0, k)),              # weight slice: resident over batch
            pl.BlockSpec(memory_space=pltpu.MemorySpace.SMEM),       # bias: scalar in SMEM
        ],
        out_specs=pl.BlockSpec((1, TB), lambda i, k: (0, i)),        # lane-dense eta slab
        scratch_shapes=[pltpu.VMEM((1, TB), jnp.float32)],           # f32 accumulator
        compiler_params=pltpu.CompilerParams(
            dimension_semantics=("parallel", "arbitrary"),
            vmem_limit_bytes=48 * 1024 * 1024,
        ),
        cost_estimate=pl.CostEstimate(
            flops=2 * B * N,
            transcendentals=B,
            bytes_accessed=itemsize * (B * N + N + B) + 4,
        ),
    )(u, weight, bias)
    return out[0]


if __name__ == "__main__":
    key = jax.random.PRNGKey(0)
    k_u, k_w, k_b = jax.random.split(key, 3)

    batch_size = 8
    size_n = 32   # user-embedding size (size_u == size_n)

    # Deterministic synthetic parameters for the single Linear(size_n -> 1).
    u = jax.random.normal(k_u, (batch_size, size_n), dtype=jnp.float32)
    bound = 1.0 / (size_n ** 0.5)
    weight = jax.random.uniform(k_w, (1, size_n), dtype=jnp.float32,
                                minval=-bound, maxval=bound)
    bias = jax.random.uniform(k_b, (1,), dtype=jnp.float32,
                              minval=-bound, maxval=bound)

    # Pure-JAX reference of the exact module semantics.
    def ref_fn(u_):
        return jax.nn.sigmoid(u_ @ weight.T + bias)[:, 0]

    # 1) Small single-tile case.
    eta = jax.block_until_ready(personalized_aggregator_gate(u, weight, bias))
    assert eta.shape == (batch_size,)
    assert jnp.allclose(eta, ref_fn(u), atol=1e-6, rtol=1e-6)

    # 2) Partial last batch tile (B not a multiple of TB) via a forced 128-row tile.
    u_big = jax.random.normal(k_u, (200, size_n), dtype=jnp.float32)
    eta_big = jax.block_until_ready(
        personalized_aggregator_gate(u_big, weight, bias, max_rows_per_tile=128))
    assert eta_big.shape == (200,)
    assert jnp.allclose(eta_big, ref_fn(u_big), atol=1e-6, rtol=1e-6)

    print("KERNEL_OK")
</pallas_src>

<mosaic_0001>
module attributes {stable_mosaic.version = 11 : i64} {
  func.func @_pag_kernel(%arg0: i32, %arg1: i32, %arg2: memref<8x32xf32, #tpu.memory_space<vmem>>, %arg3: memref<1x32xf32, #tpu.memory_space<vmem>>, %arg4: memref<1xf32, #tpu.memory_space<smem>>, %arg5: memref<1x8xf32, #tpu.memory_space<vmem>>, %arg6: memref<1x8xf32, #tpu.memory_space<vmem>>) attributes {dimension_semantics = [#tpu.dimension_semantics<parallel>, #tpu.dimension_semantics<arbitrary>], iteration_bounds = array<i64: 1, 1>, scalar_prefetch = 0 : i64, scratch_operands = 1 : i64, tpu.core_type = #tpu.core_type<tc>, window_params = [{transform_indices = @transform_0, window_bounds = array<i64: 8, 32>}, {transform_indices = @transform_1, window_bounds = array<i64: 1, 32>}, {transform_indices = @transform_2, window_bounds = array<i64: 1>}, {transform_indices = @transform_3, window_bounds = array<i64: 1, 8>}]} {
    %c0_i32 = arith.constant 0 : i32
    %0 = arith.cmpi eq, %arg1, %c0_i32 : i32
    %1 = arith.extui %0 : i1 to i32
    %c0_i32_0 = arith.constant 0 : i32
    %2 = arith.cmpi ne, %1, %c0_i32_0 : i32
    scf.if %2 {
      %cst_10 = arith.constant 0.000000e+00 : f32
      %12 = vector.broadcast %cst_10 : f32 to vector<1x8xf32>
      %c0_11 = arith.constant 0 : index
      %c0_12 = arith.constant 0 : index
      %13 = vector.load %arg6[%c0_11, %c0_12] : memref<1x8xf32, #tpu.memory_space<vmem>>, vector<1x8xf32>
      tpu.vector_store %arg6[%c0_11, %c0_12], %12 {strides = array<i32>} : memref<1x8xf32, #tpu.memory_space<vmem>>, vector<1x8xf32>,
    } else {
    }
    %c0 = arith.constant 0 : index
    %c0_1 = arith.constant 0 : index
    %3 = vector.load %arg3[%c0, %c0_1] : memref<1x32xf32, #tpu.memory_space<vmem>>, vector<1x32xf32>
    %c0_2 = arith.constant 0 : index
    %c0_3 = arith.constant 0 : index
    %4 = vector.load %arg2[%c0_2, %c0_3] : memref<8x32xf32, #tpu.memory_space<vmem>>, vector<8x32xf32>
    %c0_4 = arith.constant 0 : index
    %c0_5 = arith.constant 0 : index
    %5 = vector.load %arg6[%c0_4, %c0_5] : memref<1x8xf32, #tpu.memory_space<vmem>>, vector<1x8xf32>
    %cst = arith.constant dense<0.000000e+00> : vector<1x8xf32>
    %6 = tpu.matmul %3, %4, %cst {dimension_numbers = #tpu.dot_dimension_numbers<[1], [1], [0], [0], [0, 0, 1, 0], [], []>} : vector<1x32xf32>, vector<8x32xf32>, vector<1x8xf32> -> vector<1x8xf32>
    %7 = arith.addf %5, %6 : vector<1x8xf32>
    %c0_6 = arith.constant 0 : index
    %c0_7 = arith.constant 0 : index
    %8 = vector.load %arg6[%c0_6, %c0_7] : memref<1x8xf32, #tpu.memory_space<vmem>>, vector<1x8xf32>
    tpu.vector_store %arg6[%c0_6, %c0_7], %7 {strides = array<i32>} : memref<1x8xf32, #tpu.memory_space<vmem>>, vector<1x8xf32>,
    %c0_i32_8 = arith.constant 0 : i32
    %9 = arith.cmpi eq, %arg1, %c0_i32_8 : i32
    %10 = arith.extui %9 : i1 to i32
    %c0_i32_9 = arith.constant 0 : i32
    %11 = arith.cmpi ne, %10, %c0_i32_9 : i32
    scf.if %11 {
      %c0_10 = arith.constant 0 : index
      %c0_11 = arith.constant 0 : index
      %12 = vector.load %arg6[%c0_10, %c0_11] : memref<1x8xf32, #tpu.memory_space<vmem>>, vector<1x8xf32>
      %c0_12 = arith.constant 0 : index
      %13 = memref.load %arg4[%c0_12] : memref<1xf32, #tpu.memory_space<smem>>
      %14 = vector.broadcast %13 : f32 to vector<1x8xf32>
      %15 = arith.addf %12, %14 : vector<1x8xf32>
      %16 = arith.negf %15 : vector<1x8xf32>
      %17 = math.exp %16 : vector<1x8xf32>
      %cst_13 = arith.constant 1.000000e+00 : f32
      %18 = vector.broadcast %cst_13 : f32 to vector<1x8xf32>
      %19 = arith.addf %18, %17 : vector<1x8xf32>
      %20 = arith.divf %18, %19 : vector<1x8xf32>
      %c0_14 = arith.constant 0 : index
      %c0_15 = arith.constant 0 : index
      %21 = vector.load %arg5[%c0_14, %c0_15] : memref<1x8xf32, #tpu.memory_space<vmem>>, vector<1x8xf32>
      tpu.vector_store %arg5[%c0_14, %c0_15], %20 {strides = array<i32>} : memref<1x8xf32, #tpu.memory_space<vmem>>, vector<1x8xf32>,
    } else {
    }
    return
  }
  func.func @transform_0(%arg0: i32, %arg1: i32) -> (i32, i32) {
    %c0_i32 = arith.constant 0 : i32
    return %arg0, %arg1 : i32, i32
  }
  func.func @transform_1(%arg0: i32, %arg1: i32) -> (i32, i32) {
    %c0_i32 = arith.constant 0 : i32
    %c0_i32_0 = arith.constant 0 : i32
    return %c0_i32, %arg1 : i32, i32
  }
  func.func @transform_2(%arg0: i32, %arg1: i32) -> i32 {
    %c0_i32 = arith.constant 0 : i32
    %c0_i32_0 = arith.constant 0 : i32
    return %c0_i32 : i32
  }
  func.func @transform_3(%arg0: i32, %arg1: i32) -> (i32, i32) {
    %c0_i32 = arith.constant 0 : i32
    %c0_i32_0 = arith.constant 0 : i32
    return %c0_i32, %arg0 : i32, i32
  }
}

</mosaic_0001>

<bundles_post_ra>
// kernel: tpu_custom_call.1
= control target key start
LH: loop header
LB: loop body
LE: loop exit
PB: predicated region body
PF: predicated region fallthrough
CT: control target
= control target key end

     0   :  { %9 = vsyncpa [#allocation5], 0  ;;  %s247_s0 = inlined_call_operand.hbm [shape: f32[8,32], index: 0, kind: input, shape index: {}]   ;;  %s248_s1 = inlined_call_operand.vmem [shape: f32[1,32], index: 1, kind: input, shape index: {}]   ;;  %s249_s2 = inlined_call_operand.<no memory space> [shape: f32[1], index: 2, kind: input, shape index: {}]   ;;  %s250_s3 = inlined_call_operand.hbm [shape: f32[1,8], index: 3, kind: output, shape index: {}]  }
   0x1   :  { %10 = vsyncpa [#allocation6], 0  ;;  %s208_s12 = smov [#allocation4]  }
   0x2   :  { %s17_s13 = sshll.u32 %s208_s12, 4  ;;  %s18_s13 = int_to_ptr.vmem [resolvable:$true] %s17_s13 }
   0x3   :  { %s172_s14 = scalar_lea.vmem %s18_s13, 128  ;;  %p177_p1 = scmp.lt.s32.totalorder %s18_s13, %s18_s13 }
   0x4   :  { %p173_p0 = scmp.ne.s32.totalorder %s18_s13, %s172_s14  ;;  %p178_p2 = scmp.lt.s32.totalorder %s172_s14, %s172_s14 }
   0x6   :  { %p179_p3 = por %p178_p2, %p177_p1 }
   0x8   :  { %p180_p4 = pnand %p179_p3, %p173_p0 }
   0xa   :  { %183 = shalt.err (!%p180_p4)
}
   0xb   :  { %20 = dma.hbm_to_vmem [thread:$0]  %s247_s0, 128, %s18_s13, [#allocation5]  }
   0xc   :  { %204 = dma.done.wait [#allocation5], 128  }
   0xd   :  { %205 = vsyncadd [#allocation5], 4294967168  ;;  %vm32_vm0 = vcmask 57344   ;;  %v209_v0 = vmov 0.0   ;;  %vm210_vm1 = vmmov 0   ;;  %vm37_vm2 = vcmask 261120  }
   0xe   :  { %33 = vst.msk [vmem:[#allocation2] sm:$0x1] %vm32_vm0, %v209_v0  ;;  %151 = vmatprep.subr.mxu0 %v209_v0  ;;  %153 = vmatprep.mubr.msk.f32.mxu0 %vm210_vm1, %v209_v0  ;;  %v35_v1 = vld [vmem:[#allocation4] sm:$0xff]  ;;  %v34_v2 = vld [vmem:[%s248_s1] sm:$0x1]  ;;  %v122_v7 = vstv %s249_s2  ;;  %s211_s20 = smov [#allocation7]  }
   0xf   :  { %152 = vmatpush3.xpose.msk.msra.mxu0 %vm37_vm2, %v35_v1  ;;  %s137_s1 = sshll.u32 %s211_s20, 4  ;;  %s138_s1 = int_to_ptr.vmem [resolvable:$true] %s137_s1 }
  0x10   :  { %s184_s21 = scalar_lea.vmem %s138_s1, 16  ;;  %s188_s22 = scalar_lea.vmem %s138_s1, 32 }
  0x11   :  { %p185_p5 = scmp.ne.s32.totalorder %s138_s1, %s184_s21  ;;  %p189_p6 = scmp.lt.s32.totalorder %s138_s1, %s138_s1 }
  0x12   :  { %154 = vmatmul.mubr.msk.f32.vlgmr.msra.gmra.mxu0 %vm37_vm2, %v34_v2  ;;  %p190_p7 = scmp.lt.s32.totalorder %s188_s22, %s184_s21 }
  0x14   :  { %p191_p8 = por %p190_p7, %p189_p6 }
  0x15   :  { %v36_v3 = vld [vmem:[#allocation2] sm:$0x1] }
  0x16   :  { %p192_p9 = pnand %p191_p8, %p185_p5 }
  0xd2   :  { %v110_v4 = vpop.f32.mrf.mxu0 }
  0xd3   :  { %v114_v5 = vadd.f32 %v110_v4, %v36_v3 }
  0xd4   :  { %v155_v6 = vpop.f32.mrf.mxu0 }
  0xd5   :  { %116 = vst.msk [vmem:[#allocation2] sm:$0x1] %vm32_vm0, %v114_v5 }
  0xdc   :  { %v120_v8 = vld [vmem:[#allocation2] sm:$0x1] }
  0xdd   :  { %v123_v9 = vadd.f32 %v122_v7, %v120_v8 }
  0xdf   :  { %v148_v10 = vmul.f32 -1.442695, %v123_v9 }
  0xe1   :  { %160 = vpow2.f32 %v148_v10 }
  0xee   :  { %v161_v11 = vpop.eup %160 }
  0xef   :  { %v127_v12 = vadd.f32 1.0, %v161_v11 }
  0xf1   :  { %162 = vrcp.f32 %v127_v12 }
  0xfe   :  { %v163_v13 = vpop.eup %162 }
  0xff   :  { %130 = vst.msk [vmem:[#allocation7] sm:$0x1] %vm32_vm0, %v163_v13 }
 0x100   :  { %195 = shalt.err (!%p192_p9)
}
 0x101   :  { %140 = dma.vmem_to_hbm [thread:$0]  %s138_s1, 16, %s250_s3, [#allocation6]  }
 0x102   :  { %206 = dma.done.wait [#allocation6], 16  }
 0x103   :  { %207 = vsyncadd [#allocation6], 4294967280 }
 0x104   :  { %144 = vsyncpa [#allocation5], 1 }
 0x105   :  { %145 = vsyncpa [#allocation6], 1 }

</bundles_post_ra>
